<compile_context>
chip_gen: v6e
topology: v6e:2x2x1
jax: 0.10.0
libtpu: 0.0.40
codegen_flags: <defaults>
</compile_context>

<pallas_src>
import jax
import jax.numpy as jnp
from jax.experimental import pallas as pl
from jax.experimental.pallas import tpu as pltpu


def _round_up(n, m):
    return ((n + m - 1) // m) * m


def _fused_forward_kernel(x_ref,
                          w0_ref, b0_ref,
                          w1_ref, b1_ref,
                          wr_ref, br_ref,
                          wo_ref, bo_ref,
                          out_ref):
    # Activations flow in fp32; matmul operands are cast to bf16 for the MXU,
    # accumulating in fp32.  Elementwise math (bias/ReLU/residual) in fp32.
    h = x_ref[...]

    # encoder block 0: Linear + ReLU
    h = jnp.dot(h.astype(jnp.bfloat16), w0_ref[...],
                preferred_element_type=jnp.float32) + b0_ref[...]
    h = jnp.maximum(h, 0.0)

    # encoder block 1: Linear + ReLU
    h = jnp.dot(h.astype(jnp.bfloat16), w1_ref[...],
                preferred_element_type=jnp.float32) + b1_ref[...]
    h = jnp.maximum(h, 0.0)

    # resnet block: h + ReLU(Linear(h))
    r = jnp.dot(h.astype(jnp.bfloat16), wr_ref[...],
                preferred_element_type=jnp.float32) + br_ref[...]
    h = h + jnp.maximum(r, 0.0)

    # output block: Linear
    out_ref[...] = (jnp.dot(h.astype(jnp.bfloat16), wo_ref[...],
                            preferred_element_type=jnp.float32) + bo_ref[...])


def transformer_model_forward(x, params, *, tm=2048):
    """x: (batch, seq, d0) float32.  Returns (batch, seq, d_out) float32."""
    B, S, D0 = x.shape
    (w0, b0), (w1, b1), (wr, br), (wo, bo) = params
    D1 = w0.shape[1]
    D2 = w1.shape[1]
    d_out = wo.shape[1]

    M = B * S

    # Row tiling:
    #  * <= tm rows per tile (VMEM stays low-MiB; portable to v7x's 64 MiB),
    #  * >= 2 grid steps when possible so v7x's 2 TensorCores both get work,
    #  * adaptive TM keeps row-padding waste < 8 rows per tile.
    n_tiles = max(1, pl.cdiv(M, tm))
    if M > 8:
        n_tiles = max(n_tiles, 2)
    TM = max(8, _round_up(pl.cdiv(M, n_tiles), 8))
    Mp = n_tiles * TM

    # Only pad rows; feature dims stay unpadded (block last dim == full array
    # dim is legal).  Row zero-padding is exact and sliced off afterwards.
    x2d = x.reshape(M, D0)
    if Mp != M:
        x2d = jnp.pad(x2d, ((0, Mp - M), (0, 0)))

    # Weights in bf16 (MXU-native, half the HBM/VMEM bytes); biases fp32.
    w0b = w0.astype(jnp.bfloat16)
    w1b = w1.astype(jnp.bfloat16)
    wrb = wr.astype(jnp.bfloat16)
    wob = wo.astype(jnp.bfloat16)

    grid = (n_tiles,)

    def _const_spec(shape):
        # Same block every grid step -> stays resident in VMEM.
        return pl.BlockSpec(shape, lambda i: (0, 0))

    in_specs = [
        pl.BlockSpec((TM, D0), lambda i: (i, 0)),     # x row tile
        _const_spec((D0, D1)), _const_spec((1, D1)),
        _const_spec((D1, D2)), _const_spec((1, D2)),
        _const_spec((D2, D2)), _const_spec((1, D2)),
        _const_spec((D2, d_out)), _const_spec((1, d_out)),
    ]
    out_spec = pl.BlockSpec((TM, d_out), lambda i: (i, 0))

    flops = 2 * Mp * (D0 * D1 + D1 * D2 + D2 * D2 + D2 * d_out)
    bytes_accessed = (
        4 * Mp * D0 + 4 * Mp * d_out                               # activations (f32)
        + 2 * (D0 * D1 + D1 * D2 + D2 * D2 + D2 * d_out)           # weights (bf16)
        + 4 * (D1 + D2 + D2 + d_out)                               # biases (f32)
    )

    out = pl.pallas_call(
        _fused_forward_kernel,
        out_shape=jax.ShapeDtypeStruct((Mp, d_out), jnp.float32),
        grid=grid,
        in_specs=in_specs,
        out_specs=out_spec,
        compiler_params=pltpu.CompilerParams(
            dimension_semantics=("parallel",),
        ),
        cost_estimate=pl.CostEstimate(
            flops=flops, transcendentals=0, bytes_accessed=bytes_accessed),
    )(x2d, w0b, b0, w1b, b1, wrb, br, wob, bo)

    # Drop row padding in plain XLA (cheap narrow slice, outside the kernel).
    return out[:M].reshape(B, S, d_out)


def _init_linear(key, d_in, d_out):
    """Deterministic PyTorch-style uniform(-1/sqrt(fan_in), 1/sqrt(fan_in))."""
    kw, kb = jax.random.split(key)
    bound = 1.0 / jnp.sqrt(jnp.float32(d_in))
    w = jax.random.uniform(kw, (d_in, d_out), jnp.float32, -bound, bound)
    b = jax.random.uniform(kb, (1, d_out), jnp.float32, -bound, bound)
    return w, b


def _reference_forward(x, params):
    (w0, b0), (w1, b1), (wr, br), (wo, bo) = params
    h = x
    h = jnp.maximum(h @ w0 + b0, 0.0)
    h = jnp.maximum(h @ w1 + b1, 0.0)
    h = h + jnp.maximum(h @ wr + br, 0.0)
    return h @ wo + bo


if __name__ == "__main__":
    # Small shapes consistent with the module: input_dim = [16, 32, 64]
    input_dim = [16, 32, 64]
    d_out_final = 8
    batch, seq = 2, 8

    root = jax.random.PRNGKey(0)
    k_x, k0, k1, kr, ko = jax.random.split(root, 5)

    x = jax.random.normal(k_x, (batch, seq, input_dim[0]), jnp.float32)

    params = (
        _init_linear(k0, input_dim[0], input_dim[1]),   # encoder block 0
        _init_linear(k1, input_dim[1], input_dim[2]),   # encoder block 1
        _init_linear(kr, input_dim[2], input_dim[2]),   # resnet block
        _init_linear(ko, input_dim[2], d_out_final),    # output block
    )

    y = transformer_model_forward(x, params)
    y = jax.block_until_ready(y)

    # Correctness check vs plain-JAX fp32 reference (bf16 MXU operands ->
    # relaxed tolerance, per review note).
    y_ref = _reference_forward(x.reshape(batch * seq, input_dim[0]),
                               params).reshape(batch, seq, d_out_final)
    assert y.shape == (batch, seq, d_out_final)
    assert jnp.allclose(y, y_ref, atol=5e-2, rtol=5e-2), "mismatch vs reference"

    print("KERNEL_OK")
</pallas_src>

<mosaic_0001>
module attributes {stable_mosaic.version = 11 : i64} {
  func.func @_fused_forward_kernel(%arg0: i32, %arg1: memref<8x16xf32, #tpu.memory_space<vmem>>, %arg2: memref<16x32xbf16, #tpu.memory_space<vmem>>, %arg3: memref<1x32xf32, #tpu.memory_space<vmem>>, %arg4: memref<32x64xbf16, #tpu.memory_space<vmem>>, %arg5: memref<1x64xf32, #tpu.memory_space<vmem>>, %arg6: memref<64x64xbf16, #tpu.memory_space<vmem>>, %arg7: memref<1x64xf32, #tpu.memory_space<vmem>>, %arg8: memref<64x8xbf16, #tpu.memory_space<vmem>>, %arg9: memref<1x8xf32, #tpu.memory_space<vmem>>, %arg10: memref<8x8xf32, #tpu.memory_space<vmem>>) attributes {dimension_semantics = [#tpu.dimension_semantics<parallel>], iteration_bounds = array<i64: 2>, scalar_prefetch = 0 : i64, scratch_operands = 0 : i64, tpu.core_type = #tpu.core_type<tc>, window_params = [{transform_indices = @transform_0, window_bounds = array<i64: 8, 16>}, {pipeline_mode = #tpu.pipeline_mode<synchronous>, transform_indices = @transform_1, window_bounds = array<i64: 16, 32>}, {pipeline_mode = #tpu.pipeline_mode<synchronous>, transform_indices = @transform_2, window_bounds = array<i64: 1, 32>}, {pipeline_mode = #tpu.pipeline_mode<synchronous>, transform_indices = @transform_3, window_bounds = array<i64: 32, 64>}, {pipeline_mode = #tpu.pipeline_mode<synchronous>, transform_indices = @transform_4, window_bounds = array<i64: 1, 64>}, {pipeline_mode = #tpu.pipeline_mode<synchronous>, transform_indices = @transform_5, window_bounds = array<i64: 64, 64>}, {pipeline_mode = #tpu.pipeline_mode<synchronous>, transform_indices = @transform_6, window_bounds = array<i64: 1, 64>}, {pipeline_mode = #tpu.pipeline_mode<synchronous>, transform_indices = @transform_7, window_bounds = array<i64: 64, 8>}, {pipeline_mode = #tpu.pipeline_mode<synchronous>, transform_indices = @transform_8, window_bounds = array<i64: 1, 8>}, {transform_indices = @transform_9, window_bounds = array<i64: 8, 8>}]} {
    %c0 = arith.constant 0 : index
    %c0_0 = arith.constant 0 : index
    %0 = vector.load %arg1[%c0, %c0_0] : memref<8x16xf32, #tpu.memory_space<vmem>>, vector<8x16xf32>
    %1 = arith.truncf %0 : vector<8x16xf32> to vector<8x16xbf16>
    %c0_1 = arith.constant 0 : index
    %c0_2 = arith.constant 0 : index
    %2 = vector.load %arg2[%c0_1, %c0_2] : memref<16x32xbf16, #tpu.memory_space<vmem>>, vector<16x32xbf16>
    %cst = arith.constant dense<0.000000e+00> : vector<8x32xf32>
    %3 = tpu.matmul %1, %2, %cst {dimension_numbers = #tpu.dot_dimension_numbers<[1], [0], [0], [1], [0, 0, 1, 1], [], []>} : vector<8x16xbf16>, vector<16x32xbf16>, vector<8x32xf32> -> vector<8x32xf32>
    %c0_3 = arith.constant 0 : index
    %c0_4 = arith.constant 0 : index
    %4 = vector.load %arg3[%c0_3, %c0_4] : memref<1x32xf32, #tpu.memory_space<vmem>>, vector<1x32xf32>
    %5 = vector.broadcast %4 : vector<1x32xf32> to vector<8x32xf32>
    %6 = arith.addf %3, %5 : vector<8x32xf32>
    %cst_5 = arith.constant 0.000000e+00 : f32
    %7 = vector.broadcast %cst_5 : f32 to vector<8x32xf32>
    %8 = arith.maximumf %6, %7 : vector<8x32xf32>
    %9 = arith.truncf %8 : vector<8x32xf32> to vector<8x32xbf16>
    %c0_6 = arith.constant 0 : index
    %c0_7 = arith.constant 0 : index
    %10 = vector.load %arg4[%c0_6, %c0_7] : memref<32x64xbf16, #tpu.memory_space<vmem>>, vector<32x64xbf16>
    %cst_8 = arith.constant dense<0.000000e+00> : vector<8x64xf32>
    %11 = tpu.matmul %9, %10, %cst_8 {dimension_numbers = #tpu.dot_dimension_numbers<[1], [0], [0], [1], [0, 0, 1, 1], [], []>} : vector<8x32xbf16>, vector<32x64xbf16>, vector<8x64xf32> -> vector<8x64xf32>
    %c0_9 = arith.constant 0 : index
    %c0_10 = arith.constant 0 : index
    %12 = vector.load %arg5[%c0_9, %c0_10] : memref<1x64xf32, #tpu.memory_space<vmem>>, vector<1x64xf32>
    %13 = vector.broadcast %12 : vector<1x64xf32> to vector<8x64xf32>
    %14 = arith.addf %11, %13 : vector<8x64xf32>
    %cst_11 = arith.constant 0.000000e+00 : f32
    %15 = vector.broadcast %cst_11 : f32 to vector<8x64xf32>
    %16 = arith.maximumf %14, %15 : vector<8x64xf32>
    %17 = arith.truncf %16 : vector<8x64xf32> to vector<8x64xbf16>
    %c0_12 = arith.constant 0 : index
    %c0_13 = arith.constant 0 : index
    %18 = vector.load %arg6[%c0_12, %c0_13] : memref<64x64xbf16, #tpu.memory_space<vmem>>, vector<64x64xbf16>
    %cst_14 = arith.constant dense<0.000000e+00> : vector<8x64xf32>
    %19 = tpu.matmul %17, %18, %cst_14 {dimension_numbers = #tpu.dot_dimension_numbers<[1], [0], [0], [1], [0, 0, 1, 1], [], []>} : vector<8x64xbf16>, vector<64x64xbf16>, vector<8x64xf32> -> vector<8x64xf32>
    %c0_15 = arith.constant 0 : index
    %c0_16 = arith.constant 0 : index
    %20 = vector.load %arg7[%c0_15, %c0_16] : memref<1x64xf32, #tpu.memory_space<vmem>>, vector<1x64xf32>
    %21 = vector.broadcast %20 : vector<1x64xf32> to vector<8x64xf32>
    %22 = arith.addf %19, %21 : vector<8x64xf32>
    %cst_17 = arith.constant 0.000000e+00 : f32
    %23 = vector.broadcast %cst_17 : f32 to vector<8x64xf32>
    %24 = arith.maximumf %22, %23 : vector<8x64xf32>
    %25 = arith.addf %16, %24 : vector<8x64xf32>
    %26 = arith.truncf %25 : vector<8x64xf32> to vector<8x64xbf16>
    %c0_18 = arith.constant 0 : index
    %c0_19 = arith.constant 0 : index
    %27 = vector.load %arg8[%c0_18, %c0_19] : memref<64x8xbf16, #tpu.memory_space<vmem>>, vector<64x8xbf16>
    %cst_20 = arith.constant dense<0.000000e+00> : vector<8x8xf32>
    %28 = tpu.matmul %26, %27, %cst_20 {dimension_numbers = #tpu.dot_dimension_numbers<[1], [0], [0], [1], [0, 0, 1, 1], [], []>} : vector<8x64xbf16>, vector<64x8xbf16>, vector<8x8xf32> -> vector<8x8xf32>
    %c0_21 = arith.constant 0 : index
    %c0_22 = arith.constant 0 : index
    %29 = vector.load %arg9[%c0_21, %c0_22] : memref<1x8xf32, #tpu.memory_space<vmem>>, vector<1x8xf32>
    %30 = vector.broadcast %29 : vector<1x8xf32> to vector<8x8xf32>
    %31 = arith.addf %28, %30 : vector<8x8xf32>
    %c0_23 = arith.constant 0 : index
    %c0_24 = arith.constant 0 : index
    %32 = vector.load %arg10[%c0_23, %c0_24] : memref<8x8xf32, #tpu.memory_space<vmem>>, vector<8x8xf32>
    tpu.vector_store %arg10[%c0_23, %c0_24], %31 {strides = array<i32>} : memref<8x8xf32, #tpu.memory_space<vmem>>, vector<8x8xf32>,
    return
  }
  func.func @transform_0(%arg0: i32) -> (i32, i32) {
    %c0_i32 = arith.constant 0 : i32
    %c0_i32_0 = arith.constant 0 : i32
    return %arg0, %c0_i32 : i32, i32
  }
  func.func @transform_1(%arg0: i32) -> (i32, i32) {
    %c0_i32 = arith.constant 0 : i32
    %c0_i32_0 = arith.constant 0 : i32
    %c0_i32_1 = arith.constant 0 : i32
    return %c0_i32, %c0_i32_0 : i32, i32
  }
  func.func @transform_2(%arg0: i32) -> (i32, i32) {
    %c0_i32 = arith.constant 0 : i32
    %c0_i32_0 = arith.constant 0 : i32
    %c0_i32_1 = arith.constant 0 : i32
    return %c0_i32, %c0_i32_0 : i32, i32
  }
  func.func @transform_3(%arg0: i32) -> (i32, i32) {
    %c0_i32 = arith.constant 0 : i32
    %c0_i32_0 = arith.constant 0 : i32
    %c0_i32_1 = arith.constant 0 : i32
    return %c0_i32, %c0_i32_0 : i32, i32
  }
  func.func @transform_4(%arg0: i32) -> (i32, i32) {
    %c0_i32 = arith.constant 0 : i32
    %c0_i32_0 = arith.constant 0 : i32
    %c0_i32_1 = arith.constant 0 : i32
    return %c0_i32, %c0_i32_0 : i32, i32
  }
  func.func @transform_5(%arg0: i32) -> (i32, i32) {
    %c0_i32 = arith.constant 0 : i32
    %c0_i32_0 = arith.constant 0 : i32
    %c0_i32_1 = arith.constant 0 : i32
    return %c0_i32, %c0_i32_0 : i32, i32
  }
  func.func @transform_6(%arg0: i32) -> (i32, i32) {
    %c0_i32 = arith.constant 0 : i32
    %c0_i32_0 = arith.constant 0 : i32
    %c0_i32_1 = arith.constant 0 : i32
    return %c0_i32, %c0_i32_0 : i32, i32
  }
  func.func @transform_7(%arg0: i32) -> (i32, i32) {
    %c0_i32 = arith.constant 0 : i32
    %c0_i32_0 = arith.constant 0 : i32
    %c0_i32_1 = arith.constant 0 : i32
    return %c0_i32, %c0_i32_0 : i32, i32
  }
  func.func @transform_8(%arg0: i32) -> (i32, i32) {
    %c0_i32 = arith.constant 0 : i32
    %c0_i32_0 = arith.constant 0 : i32
    %c0_i32_1 = arith.constant 0 : i32
    return %c0_i32, %c0_i32_0 : i32, i32
  }
  func.func @transform_9(%arg0: i32) -> (i32, i32) {
    %c0_i32 = arith.constant 0 : i32
    %c0_i32_0 = arith.constant 0 : i32
    return %arg0, %c0_i32 : i32, i32
  }
}

</mosaic_0001>

<bundles_post_ra>
// kernel: tpu_custom_call.1
= control target key start
LH: loop header
LB: loop body
LE: loop exit
PB: predicated region body
PF: predicated region fallthrough
CT: control target
= control target key end

     0   :  { %14 = vsyncpa [#allocation3], 0  ;;  %s1270_s0 = inlined_call_operand.hbm [shape: f32[16,16], index: 0, kind: input, shape index: {}]   ;;  %s1271_s1 = inlined_call_operand.vmem [shape: bf16[16,32], index: 1, kind: input, shape index: {}]   ;;  %s1272_s2 = inlined_call_operand.vmem [shape: f32[1,32], index: 2, kind: input, shape index: {}]   ;;  %s1273_s3 = inlined_call_operand.hbm [shape: bf16[32,64], index: 3, kind: input, shape index: {}]   ;;  %s1274_s4 = inlined_call_operand.vmem [shape: f32[1,64], index: 4, kind: input, shape index: {}]   ;;  %s1275_s5 = inlined_call_operand.vmem [shape: bf16[64,64], index: 5, kind: input, shape index: {}]   ;;  %s1276_s6 = inlined_call_operand.hbm [shape: f32[1,64], index: 6, kind: input, shape index: {}]   ;;  %s1277_s7 = inlined_call_operand.vmem [shape: bf16[64,8], index: 7, kind: input, shape index: {}]   ;;  %s1278_s8 = inlined_call_operand.vmem [shape: f32[1,8], index: 8, kind: input, shape index: {}]   ;;  %s1279_s9 = inlined_call_operand.vmem [shape: f32[16,8], index: 9, kind: output, shape index: {}]  }
   0x1   :  { %16 = vsyncpa [#allocation3 + $0x1], 0 }
   0x2   :  { %17 = vsyncpa [#allocation5], 0  ;;  %s1100_s30 = smov 0   ;;  %s1102_s10 = smov 0  }
   0x3   :  { %s1104_s11 = smov 0   ;;  %s1106_s12 = smov 0  }
   0x4 LB: > { %s1119_s13 = sadd.s32 4294967295, %s1041_s12   ;;  %p43_p0 = scmp.ne.s32.totalorder %s1033_s10, %s1029_s30  ;;  %s1041_s12 = sphi %s1106_s12, %s1295_s12   ;;  %s1037_s11 = sphi %s1104_s11, %s1294_s11   ;;  %s1033_s10 = sphi %s1102_s10, %s1293_s10   ;;  %s1029_s30 = sphi %s1100_s30, %s1292_s30  }
   0x5   : > { %p1280_p1 = scmp.eq.s32.totalorder %s1119_s13, 0  ;;  %p763_p2 = scmp.ge.s32.totalorder %s1041_s12, 1 }
   0x6   : > { %p248_p3 = scmp.lt.s32.totalorder %s1041_s12, 3  ;;  %s1043_s16 = smov [#allocation4]  }
   0x7   : > { %p1127_p4 = por %p1280_p1, %p43_p0  ;;  %s266_s17 = sshll.u32 %s1043_s16, 4  ;;  %s267_s17 = int_to_ptr.vmem [resolvable:$true] %s266_s17 }
   0x8   : > { %p1131_p5 = pnand %p763_p2, %p248_p3  ;;  %s1044_s19 = smov [#allocation6]  }
   0x9   : > { %s1283_s14 = scalar_select %p1127_p4, 1, 0 }
   0xa   : > { %s1284_s15 = scalar_select %p1131_p5, 1, 0 }
   0xb   : > { %p858_p6 = pneg %p1131_p5  ;;  %s286_s20 = sshll.u32 %s1044_s19, 4  ;;  %s287_s20 = int_to_ptr.vmem [resolvable:$true] %s286_s20 }
   0xc   : > { %s934_s21 = scalar_lea.vmem %s267_s17, 256  ;;  %p942_p12 = scmp.lt.s32.totalorder %s267_s17, %s267_s17 }
   0xd   : > { %p1139_p7 = pnand %p858_p6, %p1280_p1  ;;  %p935_p9 = scmp.ne.s32.totalorder %s267_s17, %s934_s21 }
   0xe   : > { %p943_p13 = scmp.lt.s32.totalorder %s934_s21, %s934_s21 }
   0xf   : > { %p925_p8 = pneg %p1139_p7 }
  0x10   : > { %p944_p0 = por %p943_p13, %p942_p12 }
  0x11   : > { %p937_p10 = pnand %p935_p9, %p925_p8 }
  0x13   : > { %p938_p11 = pneg %p937_p10 }
  0x15   : > { %p945_p2 = pnand %p944_p0, %p938_p11 }
  0x17   : > { %948 = shalt.err (!%p945_p2)
}
  0x18   : > { %s1045_s22 = smov 64   ;;  %s1046_s23 = smov 4  }
  0x19   : > { %861 = dma.hbm_to_vmem [thread:$0]  (!%p1139_p7), %s1273_s3, 256, %s267_s17, [#allocation5], %s1045_s22, %s1045_s22, %s1046_s23  }
  0x1a   : > { %s960_s26 = scalar_lea.vmem %s287_s20, 16  ;;  %s967_s27 = scalar_lea.vmem %s287_s20, 32 }
  0x1b   : > { %p961_p3 = scmp.ne.s32.totalorder %s287_s20, %s960_s26  ;;  %p968_p10 = scmp.lt.s32.totalorder %s287_s20, %s287_s20 }
  0x1c   : > { %p969_p12 = scmp.lt.s32.totalorder %s967_s27, %s960_s26 }
  0x1d   : > { %p963_p6 = pnand %p961_p3, %p925_p8 }
  0x1e   : > { %p970_p11 = por %p969_p12, %p968_p10 }
  0x1f   : > { %p964_p9 = pneg %p963_p6 }
  0x21   : > { %p971_p13 = pnand %p970_p11, %p964_p9 }
  0x23   : > { %974 = shalt.err (!%p971_p13)
}
  0x24   : > { %864 = dma.hbm_to_vmem [thread:$0]  (!%p1139_p7), %s1276_s6, 16, %s287_s20, [#allocation5]  }
  0x25   : > { %s1162_s30 = sadd.s32 1, %s1041_s12   ;;  %s30_s16 = sadd.s32 1, %s1037_s11 }
  0x26   : > { %s27_s17 = ssub.s32 %s1041_s12, %s1162_s30  ;;  %p37_p8 = scmp.ne.s32.totalorder %s1037_s11, %s1033_s10 }
  0x27   : > { %p28_p0 = scmp.eq.s32.totalorder %s27_s17, 0  ;;  %p38_p2 = scmp.eq.s32.totalorder %s1041_s12, 0 }
  0x28   : > { %p871_p3 = scmp.lt.s32.totalorder %s1041_s12, 2  ;;  %s303_s18 = sand.u32 1, %s1037_s11  }
  0x29   : > { %s1173_s19 = scalar_select %p28_p0, %s1037_s11, %s30_s16  }
  0x2a   : > { %p39_p6 = por %p38_p2, %p37_p8  ;;  %s767_s21 = sshll.u32 %s303_s18, 3 }
  0x2b   : > { %s768_s22 = sshll.u32 %s1041_s12, 7  ;;  %s307_s20 = scalar_lea.vmem [#allocation2], %s767_s21 }
  0x2c   : > { %s1179_s25 = scalar_lea.hbm %s1270_s0, %s768_s22  ;;  %s314_s26 = sshll.u32 %s307_s20, 4  ;;  %s315_s26 = int_to_ptr.vmem [resolvable:$true] %s314_s26 }
  0x2d   : > { %p1181_p7 = pnand %p871_p3, %p39_p6  ;;  %s304_s28 = scalar_lea.sflag [#allocation3], %s303_s18 }
  0x2e   : > { %s975_s29 = scalar_lea.hbm %s1179_s25, 128  ;;  %s980_s17 = scalar_lea.hbm %s1270_s0, 256 }
  0x2f   : > { %p976_p9 = scmp.ne.s32.totalorder %s1179_s25, %s975_s29  ;;  %p977_p10 = pneg %p1181_p7 }
  0x30   : > { %p981_p13 = scmp.lt.s32.totalorder %s1179_s25, %s1270_s0  ;;  %p982_p8 = scmp.lt.s32.totalorder %s980_s17, %s975_s29 }
  0x31   : > { %p978_p12 = pnand %p977_p10, %p976_p9 }
  0x32   : > { %p983_p0 = por %p982_p8, %p981_p13 }
  0x33   : > { %p979_p11 = pneg %p978_p12 }
  0x35   : > { %p984_p2 = pnand %p983_p0, %p979_p11 }
  0x37   : > { %987 = shalt.err (!%p984_p2)
}
  0x38   : > { %s988_s23 = scalar_lea.vmem %s315_s26, 128  ;;  %s1047_s18 = smov [#allocation2]  }
  0x39   : > { %p989_p3 = scmp.ne.s32.totalorder %s315_s26, %s988_s23  ;;  %s993_s24 = sshll.u32 %s1047_s18, 4  ;;  %s994_s24 = int_to_ptr.vmem [resolvable:$false] %s993_s24 }
  0x3a   : > { %s995_s20 = scalar_lea.vmem %s994_s24, 256  ;;  %p996_p9 = scmp.lt.s32.totalorder %s315_s26, %s994_s24 }
  0x3b   : > { %p991_p6 = pnand %p989_p3, %p977_p10  ;;  %p997_p12 = scmp.lt.s32.totalorder %s995_s20, %s988_s23 }
  0x3d   : > { %p992_p1 = pneg %p991_p6  ;;  %p998_p4 = por %p997_p12, %p996_p9 }
  0x3f   : > { %p999_p5 = pnand %p998_p4, %p992_p1 }
  0x41   : > { %1002 = shalt.err (!%p999_p5)
}
  0x42   : > { %868 = dma.hbm_to_vmem [thread:$0]  (!%p1181_p7), %s1179_s25, 128, %s315_s26, %s304_s28  }
  0x43   : > { %p1287_p11 = scmp.ne.s32.totalorder %s1284_s15, 0 }
  0x44   : > { %s325_s29 = sand.u32 (!%p1287_p11), 1, %s1033_s10   ;;  %p1288_p10 = scmp.ne.s32.totalorder (!%p1287_p11), %s1283_s14, 0 }
  0x45   : > { %323 = sbr.rel (%p1287_p11) target bundleno = 882 (0x372), region = 56  ;;  %s770_s12 = sshll.u32 (!%p1287_p11), %s325_s29, 3 }
  0x46   : > { %s326_s16 = scalar_lea.sflag (!%p1287_p11), [#allocation3], %s325_s29  ;;  %s329_s17 = scalar_lea.vmem (!%p1287_p11), [#allocation2], %s770_s12 }
  0x4a   : > { %1020 = dma.done.wait (%p1288_p10), %s326_s16, 128  }
  0x4b   : > { %1022 = vsyncadd (%p1288_p10), %s326_s16, 4294967168  ;;  %p1289_p1 = scmp.eq.s32.totalorder %s1119_s13, 0 }
  0x4d   : > { %1024 = dma.done.wait (%p1289_p1), [#allocation5], 272   ;;  %p1290_p4 = pmov %p1289_p1 }
  0x4e   : > { %v1048_v0 = vmov 0.0   ;;  %vm1049_vm0 = vmmov 0   ;;  %v912_v1 = vld [vmem:[%s1271_s1] sm:$0xff]   ;;  %vm393_vm1 = vcmask 130048   ;;  %v913_v4 = vld [vmem:[#allocation4 + $0x8] sm:$0xff]   ;;  %v914_v5 = vld [vmem:[#allocation4] sm:$0xff]  }
  0x4f   : > { %1026 = vsyncadd (%p1290_p4), [#allocation5], 4294967024  ;;  %810 = vmatprep.subr.bf16.mxu0 %v1048_v0  ;;  %812 = vmatprep.mubr.msk.bf16.mxu0 %vm1049_vm0, %v1048_v0  ;;  %v376_v2 = vld [vmem:[%s329_s17] sm:$0xff]  ;;  %v915_v6 = vld [vmem:[%s1275_s5 + $0x18] sm:$0xff]   ;;  %vm462_vm2 = vcmask 261120   ;;  %vm547_vm3 = vcmask 523264  }
  0x50   : > { %816 = vmatprep.subr.bf16.mxu1 %v1048_v0  ;;  %820 = vmatprep.mubr.msk.bf16.mxu1 %vm1049_vm0, %v1048_v0  ;;  %v377_v3 = vpack.c.bf16 %v376_v2, %v376_v2  ;;  %v916_v7 = vld [vmem:[%s1275_s5 + $0x10] sm:$0xff]   ;;  %v774_v8 = vld [vmem:[%s1272_s2] ss:$0 sm:$0xff]  ;;  %v917_v16 = vld [vmem:[%s1275_s5 + $0x8] sm:$0xff]   ;;  %p371_p5 = scmp.lt.s32.totalorder %s1119_s13, 1  ;;  %vm676_vm4 = vcmask 64512  }
  0x51   : > { %811 = vmatpush3.bf16.msra.mxu0 %v912_v1  ;;  %817 = vmatpush3.bf16.msra.mxu1 %v913_v4  ;;  %v918_v17 = vld [vmem:[%s1275_s5] sm:$0xff]   ;;  %v919_v18 = vld [vmem:[%s1277_s7 + $0x18] sm:$0xff]   ;;  %v920_v19 = vld [vmem:[%s1277_s7 + $0x10] sm:$0xff]  }
  0x52   : > { %824 = vmatprep.subr.bf16.mxu0 %v1048_v0  ;;  %818 = vmatprep.subr.bf16.mxu1 %v1048_v0  ;;  %v777_v20 = vld [vmem:[%s1274_s4] ss:$0 sm:$0xff]  ;;  %v921_v28 = vld [vmem:[%s1277_s7 + $0x8] sm:$0xff]   ;;  %s1297_s13 = smov (!%p371_p5, %s1119_s13), 1 }
  0x53   : > { %v922_v29 = vld [vmem:[%s1277_s7] sm:$0xff]   ;;  %s773_s22 = sshll.u32 %s1297_s13, 3 }
  0x54   : > { %813 = vmatmul.mubr.msk.bf16.vlgmr.msra.gmra.mxu0 %vm393_vm1, %v377_v3  ;;  %v781_v30 = vld [vmem:[#allocation6] ss:$0 sm:$0xff]  ;;  %s374_s20 = scalar_lea.vmem %s1279_s9, %s773_s22 }
  0x55   : > { %832 = vmatprep.mubr.msk.bf16.mxu0 %vm1049_vm0, %v1048_v0  ;;  %819 = vmatpush3.bf16.msra.mxu1 %v914_v5  ;;  %v787_v39 = vld [vmem:[%s1278_s8] ss:$0 sm:$0xff] }
  0x56   : > { %836 = vmatprep.subr.bf16.mxu1 %v1048_v0  ;;  %825 = vmatpush3.bf16.msra.mxu0 %v915_v6 }
  0x57   : > { %826 = vmatprep.subr.bf16.mxu0 %v1048_v0 }
  0x5a   : > { %827 = vmatpush3.bf16.msra.mxu0 %v916_v7 }
  0x5b   : > { %828 = vmatprep.subr.bf16.mxu0 %v1048_v0 }
  0x5e   : > { %829 = vmatpush3.bf16.msra.mxu0 %v917_v16 }
  0x5f   : > { %830 = vmatprep.subr.bf16.mxu0 %v1048_v0 }
  0x62   : > { %831 = vmatpush3.bf16.msra.mxu0 %v918_v17 }
 0x114   : > { %v431_v9 = vpop.f32.mrf.mxu0 }
 0x115   : > { %v432_v10 = vadd.f32 %v774_v8, %v431_v9 }
 0x116   : > { %v814_v11 = vpop.f32.mrf.mxu0 }
 0x117   : > { %v437_v12 = vmax.f32 %v432_v10, 0.0 }
 0x118   : > { %v434_v13 = vpop.f32.mrf.mxu0 }
 0x119   : > { %v438_v14 = vpack.c.bf16 %v437_v12, %v437_v12 }
 0x11a   : > { %v815_v15 = vpop.f32.mrf.mxu0 }
 0x11b   : > { %821 = vmatmul.mubr.msk.bf16.vlgmr.msra.gmra.mxu1 %vm462_vm2, %v438_v14 }
 0x11c   : > { %844 = vmatprep.mubr.msk.bf16.mxu1 %vm1049_vm0, %v1048_v0  ;;  %837 = vmatpush3.bf16.msra.mxu1 %v919_v18 }
 0x11d   : > { %838 = vmatprep.subr.bf16.mxu1 %v1048_v0 }
 0x120   : > { %839 = vmatpush3.bf16.msra.mxu1 %v920_v19 }
 0x121   : > { %840 = vmatprep.subr.bf16.mxu1 %v1048_v0 }
 0x124   : > { %841 = vmatpush3.bf16.msra.mxu1 %v921_v28 }
 0x125   : > { %842 = vmatprep.subr.bf16.mxu1 %v1048_v0 }
 0x128   : > { %843 = vmatpush3.bf16.msra.mxu1 %v922_v29 }
 0x1db   : > { %v500_v21 = vpop.f32.mrf.mxu1 }
 0x1dc   : > { %v501_v22 = vadd.f32 %v777_v20, %v500_v21 }
 0x1dd   : > { %v822_v23 = vpop.f32.mrf.mxu1 }
 0x1de   : > { %v506_v24 = vmax.f32 %v501_v22, 0.0 }
 0x1df   : > { %v503_v25 = vpop.f32.mrf.mxu1 }
 0x1e0   : > { %v507_v26 = vpack.c.bf16 %v506_v24, %v506_v24 }
 0x1e1   : > { %v823_v27 = vpop.f32.mrf.mxu1 }
 0x1e2   : > { %833 = vmatmul.mubr.msk.bf16.vlgmr.msra.gmra.mxu0 %vm547_vm3, %v507_v26 }
 0x2a2   : > { %v585_v31 = vpop.f32.mrf.mxu0 }
 0x2a3   : > { %v586_v32 = vadd.f32 %v781_v30, %v585_v31 }
 0x2a4   : > { %v834_v33 = vpop.f32.mrf.mxu0 }
 0x2a5   : > { %v591_v34 = vmax.f32 %v586_v32, 0.0 }
 0x2a6   : > { %v588_v35 = vpop.f32.mrf.mxu0 }
 0x2a7   : > { %v592_v36 = vadd.f32 %v591_v34, %v506_v24 }
 0x2a8   : > { %v835_v37 = vpop.f32.mrf.mxu0 }
 0x2a9   : > { %v593_v38 = vpack.c.bf16 %v592_v36, %v592_v36 }
 0x2ab   : > { %845 = vmatmul.mubr.msk.bf16.vlgmr.msra.gmra.mxu1 %vm547_vm3, %v593_v38 }
 0x36b   : > { %v670_v40 = vpop.f32.mrf.mxu1 }
 0x36c   : > { %v671_v41 = vadd.f32 %v787_v39, %v670_v40 }
 0x36d   : > { %v846_v42 = vpop.f32.mrf.mxu1 }
 0x36e   : > { %677 = vst.msk [vmem:[%s374_s20] sm:$0xff] %vm676_vm4, %v671_v41 }
 0x36f   : > { %v673_v43 = vpop.f32.mrf.mxu1 }
 0x371   : > { %v847_v44 = vpop.f32.mrf.mxu1 }
 0x372 PF: > { %s1291_s13 = smov %s1162_s30  ;;  %p20_p7 = scmp.ge.s32.totalorder %s1162_s30, 4  }
 0x373   : > { %s1292_s30 = smov %s1033_s10  ;;  %s1293_s10 = smov %s1037_s11 }
 0x374   : > { %s1294_s11 = smov %s1173_s19  ;;  %s1295_s12 = smov %s1291_s13 }
 0x375   :  { %22 = sbr.rel (!%p20_p7) target bundleno = 4 (0x4), region = 104 }
 0x37a   :  { %697 = vsyncpa [#allocation3], 1 }
 0x37b   :  { %699 = vsyncpa [#allocation3 + $0x1], 1 }
 0x37c   :  { %700 = vsyncpa [#allocation5], 1 }

</bundles_post_ra>
